<compile_context>
chip_gen: v7x
topology: tpu7x:2x2x1
jax: 0.10.0
libtpu: 0.0.40
codegen_flags: <defaults>
</compile_context>

<pallas_src>
import functools
import math

import jax
import jax.numpy as jnp
from jax.experimental import pallas as pl
from jax.experimental.pallas import tpu as pltpu


def _round_up(n: int, m: int) -> int:
    return ((n + m - 1) // m) * m


def _choose_col_tile(w_out: int, h_out: int, lane_bytes: int,
                     target_bytes: int):
    """Pick the flattened spatial tile (pt lanes) and padded spatial size.

    Tiles always hold whole image columns (pt is a multiple of h_out) when
    tiling, so the moth update is tile-local (no halo).  pt is a multiple of
    128 (lane-dense stores) or covers the whole padded image.
    Returns (pt, p_pad) with p_pad % pt == 0.
    """
    p = w_out * h_out
    if p * lane_bytes <= target_bytes:
        pt = _round_up(p, 128)                 # whole image per grid step
        return pt, pt
    # Need (wt * h_out) % 128 == 0  ->  wt must be a multiple of g.
    g = 128 // math.gcd(h_out, 128)
    col_bytes = h_out * lane_bytes
    max_cols = max(1, target_bytes // col_bytes)
    wt = max(g, (max_cols // g) * g)
    wt = min(wt, _round_up(w_out, g))          # cap padding for small widths
    w_pad = _round_up(w_out, wt)
    return wt * h_out, w_pad * h_out


def _conv_moth_kernel(p_ref, w_ref, b_ref, o_ref, *,
                      h_out: int, moth_channels: int, moth_stride: int,
                      apply_moth: bool):
    """One grid step = one image x one tile of whole image columns.

    p_ref: (CKK, PT)    im2col patches, lanes are flattened (w, h) positions
    w_ref: (C_out, CKK) reshaped conv weights
    b_ref: (C_out, 1)   conv bias (f32)
    o_ref: (C_out, PT)  conv(+moth) output (f32), channels on sublanes
    """
    y = jnp.dot(w_ref[...], p_ref[...], preferred_element_type=jnp.float32)
    y = y + b_ref[...]

    if not apply_moth:
        o_ref[...] = y.astype(o_ref.dtype)
        return

    c_out, pt = o_ref.shape
    s = moth_stride
    mc = min(moth_channels, c_out)
    mc8 = min(_round_up(mc, 8), c_out)         # sublane-aligned channel group

    ym = y if mc8 == c_out else y[:mc8, :]

    # d[q] = |y[q + s] - y[q - s]| along the flattened (w, h) lane axis.
    # Rotation wrap-around / cross-column positions are zeroed by the h-mask,
    # so the roll direction and wrapped values never leak into kept outputs.
    hi = pltpu.roll(ym, shift=pt - s, axis=1)
    lo = pltpu.roll(ym, shift=s, axis=1)
    d = jnp.abs(hi - lo)

    # h = q mod h_out, computed exactly with f32 ops (q < 2^24, margin 0.5/Ho).
    q = jax.lax.broadcasted_iota(jnp.int32, (1, pt), 1).astype(jnp.float32)
    col = jnp.floor((q + 0.5) * (1.0 / h_out))
    h = q - col * h_out
    mask = (h >= s) & (h <= h_out - s - 1)     # h in [s, h_out - s)
    if mc8 > mc:                               # mask channels in [mc, mc8)
        c_idx = jax.lax.broadcasted_iota(jnp.int32, (mc8, 1), 0)
        mask = mask & (c_idx < mc)
    d = jnp.where(mask, d, 0.0)

    # Disjoint stores from the live result: no o_ref reload, no double store.
    if mc8 == c_out:
        o_ref[...] = (ym + d).astype(o_ref.dtype)
    else:
        o_ref[:mc8, :] = (ym + d).astype(o_ref.dtype)
        o_ref[mc8:, :] = y[mc8:, :].astype(o_ref.dtype)


def conv2d_moth(x, weight, bias, *, stride: int = 1, padding: int = 0,
                moth_channels=0.2, moth_stride: int = 1, min_size: int = 10,
                compute_dtype=jnp.bfloat16,
                tile_target_bytes: int = 4 * 1024 * 1024):
    """x: (B, C_in, H, W); weight: (C_out, C_in, K, K); bias: (C_out,)."""
    B, c_in, _, _ = x.shape
    c_out, c_in_w, K, K2 = weight.shape
    assert c_in == c_in_w and K == K2

    if isinstance(moth_channels, float):
        moth_channels = int(moth_channels * c_out)
    mc = min(moth_channels, c_out)
    s = moth_stride

    # ---- pure-JAX layout prep: pad + im2col (no compute) -------------------
    if padding:
        x = jnp.pad(x, ((0, 0), (0, 0), (padding, padding), (padding, padding)))
    Hp, Wp = x.shape[2], x.shape[3]
    Ho = (Hp - K) // stride + 1
    Wo = (Wp - K) // stride + 1
    P = Ho * Wo
    ckk = c_in * K * K

    cols = []
    for kh in range(K):
        for kw in range(K):
            cols.append(x[:, :,
                          kh: kh + (Ho - 1) * stride + 1: stride,
                          kw: kw + (Wo - 1) * stride + 1: stride])
    patches = jnp.stack(cols, axis=2).reshape(B, ckk, Ho, Wo)
    # Column-major (w-major) flatten: lane q = w*Ho + h.  The moth shift of
    # +-s rows is then a +-s lane shift that stays inside an image column.
    patches = patches.transpose(0, 1, 3, 2).reshape(B, ckk, P)
    patches = patches.astype(compute_dtype)

    # Spatial tiling over whole image columns (lane-dense, no halo needed).
    lane_bytes = ckk * jnp.dtype(compute_dtype).itemsize + c_out * 4
    pt, p_pad = _choose_col_tile(Wo, Ho, lane_bytes, tile_target_bytes)
    if p_pad > P:
        patches = jnp.pad(patches, ((0, 0), (0, 0), (0, p_pad - P)))
    n_t = p_pad // pt

    w2 = weight.reshape(c_out, ckk).astype(compute_dtype)   # no 128-padding
    b2 = bias.reshape(c_out, 1).astype(jnp.float32)

    apply_moth = (Ho >= min_size) and (mc > 0) and (s > 0) and (Ho - 2 * s > 0)

    kernel = functools.partial(
        _conv_moth_kernel, h_out=Ho, moth_channels=mc, moth_stride=s,
        apply_moth=apply_moth)

    out = pl.pallas_call(
        kernel,
        out_shape=jax.ShapeDtypeStruct((B, c_out, p_pad), jnp.float32),
        grid_spec=pltpu.PrefetchScalarGridSpec(
            num_scalar_prefetch=0,
            grid=(B, n_t),
            in_specs=[
                # contraction dim at full extent (no HBM padding); spatial
                # tile is lane-dense.
                pl.BlockSpec((None, ckk, pt), lambda b, t: (b, 0, t)),
                pl.BlockSpec((c_out, ckk), lambda b, t: (0, 0)),
                pl.BlockSpec((c_out, 1), lambda b, t: (0, 0)),
            ],
            out_specs=pl.BlockSpec((None, c_out, pt), lambda b, t: (b, 0, t)),
        ),
        compiler_params=pltpu.CompilerParams(
            dimension_semantics=("parallel", "parallel"),
        ),
    )(patches, w2, b2)

    # Drop spatial padding, restore NCHW.
    y = out[:, :, :P].reshape(B, c_out, Wo, Ho).transpose(0, 1, 3, 2)
    return y


def conv2d_moth_ref(x, weight, bias, *, stride: int = 1, padding: int = 0,
                    moth_channels=0.2, moth_stride: int = 1, min_size: int = 10):
    """Pure-JAX reference mirroring the PyTorch forward (f32)."""
    c_out = weight.shape[0]
    if isinstance(moth_channels, float):
        moth_channels = int(moth_channels * c_out)
    y = jax.lax.conv_general_dilated(
        x, weight, window_strides=(stride, stride),
        padding=[(padding, padding), (padding, padding)],
        dimension_numbers=("NCHW", "OIHW", "NCHW"))
    y = y + bias.reshape(1, c_out, 1, 1)
    mc, s = moth_channels, moth_stride
    if y.shape[2] >= min_size and mc > 0 and y.shape[2] - 2 * s > 0:
        d = jnp.abs(y[:, :mc, 2 * s:, :] - y[:, :mc, :-2 * s, :])
        y = y.at[:, :mc, s:-s, :].add(d)
    return y


if __name__ == "__main__":
    key = jax.random.PRNGKey(0)
    kx, kw, kb = jax.random.split(key, 3)

    B, C_in, H, W = 2, 4, 16, 16
    C_out, K = 8, 3
    stride, padding = 1, 1          # H_out = W_out = 16 >= min_size -> moth on

    x = jax.random.normal(kx, (B, C_in, H, W), dtype=jnp.float32)
    weight = 0.1 * jax.random.normal(kw, (C_out, C_in, K, K), dtype=jnp.float32)
    bias = 0.1 * jax.random.normal(kb, (C_out,), dtype=jnp.float32)

    out = conv2d_moth(x, weight, bias, stride=stride, padding=padding,
                      moth_channels=0.2, moth_stride=1, min_size=10)
    out = jax.block_until_ready(out)

    ref = conv2d_moth_ref(x, weight, bias, stride=stride, padding=padding,
                          moth_channels=0.2, moth_stride=1, min_size=10)
    assert out.shape == ref.shape == (B, C_out, 16, 16)
    assert out.dtype == ref.dtype
    # Tolerance covers the bf16 input cast (per perf review; f32 accumulation
    # on the MXU) plus the reference's own default-precision f32 conv; typical
    # error is ~1e-3, well inside this bound.
    assert jnp.allclose(out, ref, atol=5e-2, rtol=5e-2), "mismatch vs reference"

    print("KERNEL_OK")
</pallas_src>

<mosaic_0001>
module attributes {stable_mosaic.version = 11 : i64} {
  func.func @_conv_moth_kernel(%arg0: i32, %arg1: i32, %arg2: memref<1x36x256xbf16, #tpu.memory_space<vmem>>, %arg3: memref<8x36xbf16, #tpu.memory_space<vmem>>, %arg4: memref<8x1xf32, #tpu.memory_space<vmem>>, %arg5: memref<1x8x256xf32, #tpu.memory_space<vmem>>) attributes {dimension_semantics = [#tpu.dimension_semantics<parallel>, #tpu.dimension_semantics<parallel>], iteration_bounds = array<i64: 2, 1>, scalar_prefetch = 0 : i64, scratch_operands = 0 : i64, tpu.core_type = #tpu.core_type<tc>, window_params = [{transform_indices = @transform_0, window_bounds = array<i64: 1, 36, 256>}, {pipeline_mode = #tpu.pipeline_mode<synchronous>, transform_indices = @transform_1, window_bounds = array<i64: 8, 36>}, {pipeline_mode = #tpu.pipeline_mode<synchronous>, transform_indices = @transform_2, window_bounds = array<i64: 8, 1>}, {transform_indices = @transform_3, window_bounds = array<i64: 1, 8, 256>}]} {
    %c0 = arith.constant 0 : index
    %c0_0 = arith.constant 0 : index
    %0 = vector.load %arg3[%c0, %c0_0] : memref<8x36xbf16, #tpu.memory_space<vmem>>, vector<8x36xbf16>
    %c0_1 = arith.constant 0 : index
    %c0_2 = arith.constant 0 : index
    %c0_3 = arith.constant 0 : index
    %1 = vector.load %arg2[%c0_1, %c0_2, %c0_3] : memref<1x36x256xbf16, #tpu.memory_space<vmem>>, vector<1x36x256xbf16>
    %2 = vector.shape_cast %1 : vector<1x36x256xbf16> to vector<36x256xbf16>
    %cst = arith.constant dense<0.000000e+00> : vector<8x256xf32>
    %3 = tpu.matmul %0, %2, %cst {dimension_numbers = #tpu.dot_dimension_numbers<[1], [0], [0], [1], [0, 0, 1, 1], [], []>} : vector<8x36xbf16>, vector<36x256xbf16>, vector<8x256xf32> -> vector<8x256xf32>
    %c0_4 = arith.constant 0 : index
    %c0_5 = arith.constant 0 : index
    %4 = vector.load %arg4[%c0_4, %c0_5] : memref<8x1xf32, #tpu.memory_space<vmem>>, vector<8x1xf32>
    %5 = vector.broadcast %4 : vector<8x1xf32> to vector<8x256xf32>
    %6 = arith.addf %3, %5 : vector<8x256xf32>
    %c255_i32 = arith.constant 255 : i32
    %7 = tpu.dynamic_rotate %6 by %c255_i32 dim 1 : vector<8x256xf32>, i32 -> vector<8x256xf32>
    %c1_i32 = arith.constant 1 : i32
    %8 = tpu.dynamic_rotate %6 by %c1_i32 dim 1 : vector<8x256xf32>, i32 -> vector<8x256xf32>
    %9 = arith.subf %7, %8 : vector<8x256xf32>
    %10 = math.absf %9 : vector<8x256xf32>
    %11 = tpu.iota {dimensions = array<i32: 1>} : vector<1x256xi32>
    %12 = arith.sitofp %11 : vector<1x256xi32> to vector<1x256xf32>
    %cst_6 = arith.constant 5.000000e-01 : f32
    %13 = vector.broadcast %cst_6 : f32 to vector<1x256xf32>
    %14 = arith.addf %12, %13 : vector<1x256xf32>
    %cst_7 = arith.constant 6.250000e-02 : f32
    %15 = vector.broadcast %cst_7 : f32 to vector<1x256xf32>
    %16 = arith.mulf %14, %15 : vector<1x256xf32>
    %17 = math.floor %16 : vector<1x256xf32>
    %cst_8 = arith.constant 1.600000e+01 : f32
    %18 = vector.broadcast %cst_8 : f32 to vector<1x256xf32>
    %19 = arith.mulf %17, %18 : vector<1x256xf32>
    %20 = arith.subf %12, %19 : vector<1x256xf32>
    %cst_9 = arith.constant 1.000000e+00 : f32
    %21 = vector.broadcast %cst_9 : f32 to vector<1x256xf32>
    %22 = arith.cmpf oge, %20, %21 : vector<1x256xf32>
    %cst_10 = arith.constant 1.400000e+01 : f32
    %23 = vector.broadcast %cst_10 : f32 to vector<1x256xf32>
    %24 = arith.cmpf ole, %20, %23 : vector<1x256xf32>
    %25 = arith.andi %22, %24 : vector<1x256xi1>
    %26 = tpu.iota {dimensions = array<i32: 0>} : vector<8x1xi32>
    %c1_i32_11 = arith.constant 1 : i32
    %27 = vector.broadcast %c1_i32_11 : i32 to vector<8x1xi32>
    %28 = arith.cmpi slt, %26, %27 : vector<8x1xi32>
    %29 = vector.broadcast %25 : vector<1x256xi1> to vector<8x256xi1>
    %30 = vector.broadcast %28 : vector<8x1xi1> to vector<8x256xi1>
    %31 = arith.andi %29, %30 : vector<8x256xi1>
    %cst_12 = arith.constant 0.000000e+00 : f32
    %32 = vector.broadcast %cst_12 : f32 to vector<8x256xf32>
    %33 = arith.select %31, %10, %32 : vector<8x256xi1>, vector<8x256xf32>
    %34 = arith.addf %6, %33 : vector<8x256xf32>
    %c0_13 = arith.constant 0 : index
    %c0_14 = arith.constant 0 : index
    %c0_15 = arith.constant 0 : index
    %35 = vector.load %arg5[%c0_13, %c0_14, %c0_15] : memref<1x8x256xf32, #tpu.memory_space<vmem>>, vector<1x8x256xf32>
    %36 = vector.shape_cast %35 : vector<1x8x256xf32> to vector<8x256xf32>
    %37 = vector.shape_cast %34 : vector<8x256xf32> to vector<1x8x256xf32>
    tpu.vector_store %arg5[%c0_13, %c0_14, %c0_15], %37 {strides = array<i32>} : memref<1x8x256xf32, #tpu.memory_space<vmem>>, vector<1x8x256xf32>,
    return
  }
  func.func @transform_0(%arg0: i32, %arg1: i32) -> (i32, i32, i32) {
    %c0_i32 = arith.constant 0 : i32
    %c0_i32_0 = arith.constant 0 : i32
    return %arg0, %c0_i32, %arg1 : i32, i32, i32
  }
  func.func @transform_1(%arg0: i32, %arg1: i32) -> (i32, i32) {
    %c0_i32 = arith.constant 0 : i32
    %c0_i32_0 = arith.constant 0 : i32
    %c0_i32_1 = arith.constant 0 : i32
    return %c0_i32, %c0_i32_0 : i32, i32
  }
  func.func @transform_2(%arg0: i32, %arg1: i32) -> (i32, i32) {
    %c0_i32 = arith.constant 0 : i32
    %c0_i32_0 = arith.constant 0 : i32
    %c0_i32_1 = arith.constant 0 : i32
    return %c0_i32, %c0_i32_0 : i32, i32
  }
  func.func @transform_3(%arg0: i32, %arg1: i32) -> (i32, i32, i32) {
    %c0_i32 = arith.constant 0 : i32
    %c0_i32_0 = arith.constant 0 : i32
    return %arg0, %c0_i32, %arg1 : i32, i32, i32
  }
}

</mosaic_0001>

<bundles_post_ra>
// kernel: tpu_custom_call.1
= control target key start
LH: loop header
LB: loop body
LE: loop exit
PB: predicated region body
PF: predicated region fallthrough
CT: control target
= control target key end

     0   :  { %8 = vsyncpa [#allocation3], 0  ;;  %s754_s0 = inlined_call_operand.vmem [shape: bf16[2,36,256], index: 0, kind: input, shape index: {}]   ;;  %s755_s1 = inlined_call_operand.vmem [shape: bf16[8,36], index: 1, kind: input, shape index: {}]   ;;  %s756_s2 = inlined_call_operand.vmem [shape: f32[8,1], index: 2, kind: input, shape index: {}]   ;;  %s757_s3 = inlined_call_operand.hbm [shape: f32[2,8,256], index: 3, kind: output, shape index: {}]  }
   0x1   :  { %10 = vsyncpa [#allocation3 + $0x1], 0  ;;  %s632_s12 = smov 0   ;;  %s634_s13 = smov 0  }
   0x2   :  { %s636_s14 = smov 0   ;;  %s638_s15 = smov 0  }
   0x3   :  { %s640_s16 = smov 0   ;;  %s642_s17 = smov 0  }
   0x4 LB: > { %s439_s18 = sadd.s32 4294967295, %s606_s17   ;;  %s440_s19 = sadd.s32 4294967294, %s606_s17   ;;  %s606_s17 = sphi %s642_s17, %s16_s17   ;;  %s602_s16 = sphi %s640_s16, %s764_s16   ;;  %s598_s15 = sphi %s638_s15, %s763_s15   ;;  %s594_s14 = sphi %s636_s14, %s762_s14   ;;  %s590_s13 = sphi %s634_s13, %s761_s13   ;;  %s586_s12 = sphi %s632_s12, %s760_s12  }
   0x5   : > { %s28_s20 = sadd.s32 1, %s602_s16  ;;  %s107_s21 = sadd.s32 1, %s594_s14 }
   0x6   : > { %p30_p0 = scmp.ge.s32.totalorder %s28_s20, 2  ;;  %p117_p1 = scmp.ne.s32.totalorder %s594_s14, %s590_s13 }
   0x7   : > { %p118_p2 = scmp.eq.s32.totalorder %s439_s18, 1  ;;  %p123_p3 = scmp.ne.s32.totalorder %s590_s13, %s586_s12 }
   0x8   : > { %s766_s20 = smov (%p30_p0, %s28_s20), 0  ;;  %p124_p5 = scmp.eq.s32.totalorder %s440_s19, 1 }
   0x9   : > { %p672_p4 = por %p118_p2, %p117_p1  ;;  %s102_s23 = ssub.s32 %s602_s16, %s766_s20 }
   0xa   : > { %p443_p6 = scmp.ge.s32.totalorder %s606_s17, 1  ;;  %p105_p7 = scmp.eq.s32.totalorder %s102_s23, 0 }
   0xb   : > { %p679_p8 = por %p124_p5, %p123_p3  ;;  %p161_p9 = scmp.lt.s32.totalorder %s606_s17, 3 }
   0xc   : > { %s685_s25 = scalar_select %p105_p7, %s594_s14, %s107_s21  }
   0xd   : > { %p162_p10 = pnand %p443_p6, %p161_p9 }
   0xe   : > { %p190_p11 = scmp.lt.s32.totalorder (!%p162_p10), %s598_s15, 1  ;;  %v608_v0 = vmov (!%p162_p10), 0   ;;  %v207_v1 = vld [vmem:[%s756_s2] sm:$0xff] (!%p162_p10)  ;;  %vm242_vm0 = vcmask (!%p162_p10), 1041408   ;;  %vm238_vm1 = vcmask (!%p162_p10), 293888   ;;  %s609_s8 = smov (!%p162_p10), 127   ;;  %v294_v18 = vlaneseq (!%p162_p10) }
   0xf   : > { %165 = sbr.rel (%p162_p10) target bundleno = 396 (0x18c), region = 32  ;;  %281 = vmatprep.mubr.bf16.mxu0 (!%p162_p10), %v608_v0  ;;  %519 = vset.pattern.permute.xlu0 (!%p162_p10), %v608_v0  ;;  %v201_v10 = vld [vmem:[%s755_s1] sm:$0xf] (!%p162_p10)  ;;  %s610_s9 = smov (!%p162_p10), 1  }
  0x10   : > { %210 = vperm.xlu0 (!%p162_p10), %519, %v207_v1   ;;  %v295_v19 = vand.u32 (!%p162_p10), 127, %v294_v18  ;;  %v330_v34 = vshrl.u32 (!%p162_p10), %v294_v18, 7  ;;  %s186_s10 = sand.u32 (!%p162_p10), 1, %s590_s13   ;;  %s459_s18 = sshll.u32 (!%p162_p10), %s598_s15, 8 }
  0x11   : > { %s444_s11 = sshll.u32 (!%p162_p10), %s186_s10, 4  ;;  %s705_s27 = scalar_lea.hbm (!%p162_p10), %s757_s3, %s459_s18 }
  0x12   : > { %v310_v20 = vadd.s32 (!%p162_p10), 128, %v295_v19  ;;  %v311_v21 = vcvt.s32.f32 (!%p162_p10), %v295_v19  ;;  %vm296_vm6 = vcmp.lt.s32.totalorder (!%p162_p10), %v295_v19, 127  ;;  %vm303_vm7 = vcmp.lt.s32.totalorder (!%p162_p10), %v295_v19, 1  ;;  %s188_s19 = scalar_lea.vmem (!%p162_p10), [#allocation2], %s444_s11 }
  0x13   : > { %vm331_vm9 = vcmp.lt.s32.totalorder (!%p162_p10), %v330_v34, 1  ;;  %s363_s21 = sshll.u32 (!%p162_p10), %s188_s19, 4  ;;  %s707_s21 = int_to_ptr.vmem [resolvable:$true] %s363_s21 }
  0x14   : > { %v312_v22 = vcvt.s32.f32 (!%p162_p10), %v310_v20  ;;  %v313_v23 = vadd.f32 (!%p162_p10), 0.5, %v311_v21 }
  0x16   : > { %s191_s28 = scalar_select %p190_p11, %s598_s15, 1  ;;  %v314_v24 = vadd.f32 0.5, %v312_v22  ;;  %v315_v25 = vmul.f32 0.0625, %v313_v23 }
  0x17   : > { %s347_s15 = scalar_lea.sflag [#allocation3], %s186_s10 }
  0x18   : > { %s460_s29 = smul.u32 40, %s191_s28  ;;  %v316_v26 = vmul.f32 0.0625, %v314_v24  ;;  %v317_v27 = vfloor.f32 %v315_v25  ;;  %s528_s28 = scalar_lea.vmem %s707_s21, 256 }
  0x19   : > { %p529_p12 = scmp.ne.s32.totalorder %s707_s21, %s528_s28 }
  0x1a   : > { %s197_s5 = scalar_lea.vmem %s754_s0, %s460_s29  ;;  %v318_v28 = vfloor.f32 %v316_v26  ;;  %v319_v29 = vmul.f32 16.0, %v317_v27  ;;  %s611_s29 = smov [#allocation2]  }
  0x1b   : > { %v520_v2 = vld [vmem:[%s197_s5 + $0x4] ss:$8 sps:$4 sm:$0xff]   ;;  %v522_v3 = vld [vmem:[%s197_s5] ss:$8 sps:$4 sm:$0xff]   ;;  %v523_v4 = vld [vmem:[%s197_s5 + $0x14] ss:$8 sps:$4 sm:$0xff]   ;;  %p530_p13 = pnand %p529_p12, %p672_p4 }
  0x1c   : > { %249 = vmatprep.subr.bf16.mxu0 %v520_v2  ;;  %v206_v5 = vld [vmem:[%s197_s5 + $0x20] sm:$0x33]  ;;  %v525_v6 = vld [vmem:[%s197_s5 + $0x10] ss:$8 sps:$4 sm:$0xff]   ;;  %v320_v30 = vmul.f32 16.0, %v318_v28  ;;  %v321_v31 = vsub.f32 %v311_v21, %v319_v29  ;;  %s532_s30 = sshll.u32 %s611_s29, 4  ;;  %s533_s30 = int_to_ptr.vmem [resolvable:$false] %s532_s30 }
  0x1d   : > { %250 = vmatpush1.bf16.msra.mxu0 %v522_v3  ;;  %v451_v7 = vcombine.high %v206_v5, %v206_v5  ;;  %v450_v8 = vcombine.low %v206_v5, %v206_v5  ;;  %p531_p0 = pneg %p530_p13  ;;  %s534_s4 = scalar_lea.vmem %s533_s30, 512 }
  0x1e   : > { %251 = vmatprep.subr.bf16.mxu0 %v523_v4  ;;  %v322_v32 = vsub.f32 %v312_v22, %v320_v30  ;;  %vm323_vm2 = vcmp.ge.f32.partialorder %v321_v31, 1.0  ;;  %vm325_vm3 = vcmp.le.f32.partialorder %v321_v31, 14.0  ;;  %p535_p1 = scmp.lt.s32.totalorder %s707_s21, %s533_s30  ;;  %p536_p2 = scmp.lt.s32.totalorder %s534_s4, %s528_s28 }
  0x1f   : > { %v244_v9 = vsel %vm242_vm0, %v450_v8, 0  ;;  %vm327_vm8 = vmand %vm323_vm2, %vm325_vm3 }
  0x20   : > { %vm324_vm4 = vcmp.ge.f32.partialorder %v322_v32, 1.0  ;;  %vm326_vm5 = vcmp.le.f32.partialorder %v322_v32, 14.0  ;;  %vm338_vm11 = vmand %vm327_vm8, %vm331_vm9  ;;  %p537_p3 = por %p536_p2, %p535_p1 }
  0x21   : > { %252 = vmatpush1.bf16.msra.mxu0 %v525_v6  ;;  %vm328_vm10 = vmand %vm324_vm4, %vm326_vm5 }
  0x22   : > { %452 = vmatprep.subr.msk.bf16.mxu0 %vm242_vm0, %v451_v7  ;;  %vm339_vm12 = vmand %vm328_vm10, %vm331_vm9  ;;  %p538_p5 = pnand %p537_p3, %p531_p0 }
  0x25   : > { %254 = vmatpush1.bf16.msra.mxu0 %v244_v9 }
  0x28   : > { %453 = vmatmul.mubr.msk.bf16.vlgmr.msra.gmra.mrb[0].mxu0 %vm238_vm1, %v201_v10 }
  0x8f   : > { %v211_v11 = vpop.permute.xlu0 %210 }
  0xfb   : > { %v283_v12 = vpop.f32.mrb[0].mxu0 }
  0xfc   : > { %v284_v13 = vadd.f32 %v283_v12, %v211_v11  ;;  %v285_v14 = vpop.f32.mrb[1].mxu0 }
  0xfd   : > { %v286_v15 = vadd.f32 %v285_v14, %v211_v11  ;;  %v287_v16 = vpop.f32.mrb[2].mxu0 }
  0xfe   : > { %v288_v17 = vpop.f32.mrb[3].mxu0  ;;  %290 = vrot.lane.b32.xlu0 %v284_v13, %s609_s8 }
  0xff   : > { %292 = vrot.lane.b32.xlu1 %v286_v15, %s609_s8 }
 0x102   : > { %301 = vrot.lane.b32.xlu0 %v286_v15, %s610_s9 }
 0x103   : > { %299 = vrot.lane.b32.xlu1 %v284_v13, %s610_s9 }
 0x170   : > { %v291_v33 = vpop.permute.xlu0 %290 }
 0x171   : > { %v293_v35 = vpop.permute.xlu1 %292 }
 0x172   : > { %v297_v38 = vsel %vm296_vm6, %v291_v33, %v293_v35  ;;  %v298_v39 = vsel %vm296_vm6, %v293_v35, %v291_v33 }
 0x174   : > { %v302_v36 = vpop.permute.xlu0 %301 }
 0x175   : > { %v300_v37 = vpop.permute.xlu1 %299 }
 0x176   : > { %v304_v40 = vsel %vm303_vm7, %v300_v37, %v302_v36  ;;  %v305_v41 = vsel %vm303_vm7, %v302_v36, %v300_v37 }
 0x177   : > { %v306_v42 = vsub.f32 %v297_v38, %v305_v41  ;;  %v307_v43 = vsub.f32 %v298_v39, %v304_v40 }
 0x179   : > { %v308_v44 = vand.u32 2147483647, %v306_v42  ;;  %v309_v45 = vand.u32 2147483647, %v307_v43 }
 0x17b   : > { %v340_v46 = vsel %vm338_vm11, %v308_v44, 0.0  ;;  %v341_v47 = vsel %vm339_vm12, %v309_v45, 0.0 }
 0x17c   : > { %v342_v48 = vadd.f32 %v340_v46, %v284_v13  ;;  %v343_v49 = vadd.f32 %v341_v47, %v286_v15 }
 0x17e   : > { %344 = vst [vmem:[%s188_s19] sm:$0xff] %v342_v48  ;;  %345 = vst [vmem:[%s188_s19 + $0x8] sm:$0xff] %v343_v49 }
 0x17f   : > { %541 = shalt.err (!%p538_p5)
}
 0x180   : > { %s542_s5 = scalar_lea.hbm %s705_s27, 256  ;;  %s546_s8 = scalar_lea.hbm %s757_s3, 512 }
 0x181   : > { %p543_p6 = scmp.ne.s32.totalorder %s705_s27, %s542_s5  ;;  %p547_p10 = scmp.lt.u32.totalorder %s705_s27, %s757_s3 }
 0x182   : > { %p548_p11 = scmp.lt.u32.totalorder %s546_s8, %s542_s5  ;;  %p550_p13 = scmp.lt.u32.totalorder %s542_s5, %s705_s27 }
 0x183   : > { %p544_p7 = pnand %p543_p6, %p672_p4 }
 0x184   : > { %p549_p12 = por %p548_p11, %p547_p10 }
 0x185   : > { %p545_p9 = pneg %p544_p7 }
 0x186   : > { %p551_p0 = por %p550_p13, %p549_p12 }
 0x188   : > { %p552_p1 = pnand %p551_p0, %p545_p9 }
 0x18a   : > { %555 = shalt.err (!%p552_p1)
}
 0x18b   : > { %461 = dma.vmem_to_hbm [thread:$0]  (%p672_p4), %s707_s21, 256, %s705_s27, %s347_s15  }
 0x18c PF: > { %p467_p2 = scmp.ge.s32.totalorder %s606_s17, 2  ;;  %s375_s11 = sand.u32 1, %s586_s12  }
 0x18d   : > { %s376_s18 = scalar_lea.sflag [#allocation3], %s375_s11 }
 0x18e   : > { %p464_p3 = pnand %p467_p2, %p679_p8 }
 0x190   : > { %581 = dma.done.wait (!%p464_p3), %s376_s18, 256  }
 0x191   : > { %583 = vsyncadd (!%p464_p3), %s376_s18, 4294967040  ;;  %s16_s17 = sadd.s32 1, %s606_s17   ;;  %s760_s12 = smov %s590_s13 }
 0x192   : > { %p13_p5 = scmp.ge.s32.totalorder %s16_s17, 4   ;;  %s761_s13 = smov %s594_s14 }
 0x193   : > { %s762_s14 = smov %s685_s25  ;;  %s763_s15 = smov %s602_s16 }
 0x194   : > { %s764_s16 = smov %s766_s20  ;;  %15 = sbr.rel (!%p13_p5) target bundleno = 4 (0x4), region = 67 }
 0x19b   :  { %381 = vsyncpa [#allocation3], 1 }
 0x19c   :  { %383 = vsyncpa [#allocation3 + $0x1], 1 }

</bundles_post_ra>
